<compile_context>
chip_gen: v6e
topology: v6e:2x2x1
jax: 0.10.0
libtpu: 0.0.40
codegen_flags: <defaults>
</compile_context>

<pallas_src>
import functools

import numpy as np
import jax
import jax.numpy as jnp
from jax import lax
from jax.experimental import pallas as pl
from jax.experimental.pallas import tpu as pltpu


def _kv_prep_kernel(k_ref, v_ref, wk_ref, bk_ref, wv_ref, bv_ref, wo_ref,
                    k_all_ref, vwo_ref, *, d_v, h):
    """Hoisted K/V projections + per-head V@Wo fusion, computed once over nk."""
    bf16 = jnp.bfloat16
    # k_all = K @ Wk + bk  (bf16 MXU inputs, f32 accumulate, bf16 store)
    k_all = (jnp.dot(k_ref[...].astype(bf16), wk_ref[...].astype(bf16),
                     preferred_element_type=jnp.float32) + bk_ref[...])
    k_all_ref[...] = k_all.astype(k_all_ref.dtype)

    # v_all = V @ Wv + bv  (kept f32 until the per-head Wo fusion)
    v_all = (jnp.dot(v_ref[...].astype(bf16), wv_ref[...].astype(bf16),
                     preferred_element_type=jnp.float32) + bv_ref[...])

    # vwo[h] = v_all_h @ Wo_h  -> (tk, d_model) per head, lane-dense store.
    for hd in range(h):
        v_h = v_all[:, hd * d_v:(hd + 1) * d_v].astype(bf16)        # (tk, d_v)
        wo_h = wo_ref[hd * d_v:(hd + 1) * d_v, :].astype(bf16)      # (d_v, d_model)
        vwo_ref[hd] = jnp.dot(v_h, wo_h,
                              preferred_element_type=jnp.float32
                              ).astype(vwo_ref.dtype)


def _attn_kernel(q_ref, wq_ref, bq_ref, k_all_ref, vwo_ref, bo_ref, o_ref,
                 *, d_k, h):
    """One (tq, d_model) query tile: q-projection + per-head attention + acc."""
    bf16 = jnp.bfloat16
    scale = np.float32(1.0 / np.sqrt(d_k))

    # q_all = (Q @ Wq + bq) * 1/sqrt(d_k); scale folded into q (tq*h*d_k elems).
    q_all = (jnp.dot(q_ref[...].astype(bf16), wq_ref[...].astype(bf16),
                     preferred_element_type=jnp.float32) + bq_ref[...]) * scale
    q_all = q_all.astype(bf16)                                       # (tq, h*d_k)

    k_all = k_all_ref[...]                                           # (nk, h*d_k) bf16

    # Running (tq, d_model) f32 accumulator -> no concat, no final Wo matmul.
    acc = jnp.zeros(o_ref.shape, jnp.float32)
    for hd in range(h):                      # small static head loop (h=4)
        q_h = q_all[:, hd * d_k:(hd + 1) * d_k]                      # (tq, d_k)
        k_h = k_all[:, hd * d_k:(hd + 1) * d_k]                      # (nk, d_k)

        # Contract last axes directly -> no explicit transpose of k_h.
        s = lax.dot_general(q_h, k_h, (((1,), (1,)), ((), ())),
                            preferred_element_type=jnp.float32)      # (tq, nk) f32

        # Numerically stable softmax over keys; divide on the EUP slot.
        m = jnp.max(s, axis=-1, keepdims=True)
        e = jnp.exp(s - m)
        p = e * pl.reciprocal(jnp.sum(e, axis=-1, keepdims=True), approx=True)

        # N = d_model = 128 lane-wide PV matmul (fused with Wo per head).
        acc = acc + jnp.dot(p.astype(bf16), vwo_ref[hd],
                            preferred_element_type=jnp.float32)      # (tq, d_model)

    o_ref[...] = (acc + bo_ref[...]).astype(o_ref.dtype)


def scaled_dot_product_attention(queries, keys, values, params,
                                 *, d_model, d_k, d_v, h, tq=128, tk=128):
    nq = queries.shape[0]
    nk = keys.shape[0]
    wq, bq, wk, bk, wv, bv, wo, bo = params

    tq = min(tq, nq)
    tk = min(tk, nk)
    assert nq % tq == 0, "nq must be a multiple of the query tile size"
    assert nk % tk == 0, "nk must be a multiple of the key tile size"

    vmem_limit = 32 * 1024 * 1024   # safe default on v5e/v6e/v7x at these shapes

    # --- Step 1: hoisted K/V projections + per-head V@Wo fusion (once). -------
    kv_kernel = functools.partial(_kv_prep_kernel, d_v=d_v, h=h)
    k_all, vwo = pl.pallas_call(
        kv_kernel,
        out_shape=(jax.ShapeDtypeStruct((nk, h * d_k), jnp.bfloat16),
                   jax.ShapeDtypeStruct((h, nk, d_model), jnp.bfloat16)),
        grid_spec=pltpu.PrefetchScalarGridSpec(
            num_scalar_prefetch=0,
            grid=(nk // tk,),
            in_specs=[
                pl.BlockSpec((tk, d_model), lambda i: (i, 0)),       # K tile
                pl.BlockSpec((tk, d_model), lambda i: (i, 0)),       # V tile
                pl.BlockSpec((d_model, h * d_k), lambda i: (0, 0)),  # Wk
                pl.BlockSpec((1, h * d_k), lambda i: (0, 0)),        # bk
                pl.BlockSpec((d_model, h * d_v), lambda i: (0, 0)),  # Wv
                pl.BlockSpec((1, h * d_v), lambda i: (0, 0)),        # bv
                pl.BlockSpec((h * d_v, d_model), lambda i: (0, 0)),  # Wo
            ],
            out_specs=(
                pl.BlockSpec((tk, h * d_k), lambda i: (i, 0)),       # k_all
                pl.BlockSpec((h, tk, d_model), lambda i: (0, i, 0)), # vwo
            ),
        ),
        compiler_params=pltpu.CompilerParams(
            dimension_semantics=("parallel",),
            vmem_limit_bytes=vmem_limit),
    )(keys, values, wk, bk.reshape(1, -1), wv, bv.reshape(1, -1), wo)

    # --- Step 2: attention over query tiles (megacore-parallel). --------------
    attn_kernel = functools.partial(_attn_kernel, d_k=d_k, h=h)
    return pl.pallas_call(
        attn_kernel,
        out_shape=jax.ShapeDtypeStruct((nq, d_model), jnp.float32),
        grid_spec=pltpu.PrefetchScalarGridSpec(
            num_scalar_prefetch=0,
            grid=(nq // tq,),
            in_specs=[
                pl.BlockSpec((tq, d_model), lambda i: (i, 0)),        # Q tile
                pl.BlockSpec((d_model, h * d_k), lambda i: (0, 0)),   # Wq
                pl.BlockSpec((1, h * d_k), lambda i: (0, 0)),         # bq
                pl.BlockSpec((nk, h * d_k), lambda i: (0, 0)),        # k_all (resident)
                pl.BlockSpec((h, nk, d_model), lambda i: (0, 0, 0)),  # vwo (resident)
                pl.BlockSpec((1, d_model), lambda i: (0, 0)),         # bo
            ],
            out_specs=pl.BlockSpec((tq, d_model), lambda i: (i, 0)),  # one store/tile
        ),
        compiler_params=pltpu.CompilerParams(
            dimension_semantics=("parallel",),       # v7x: both TCs take tiles
            vmem_limit_bytes=vmem_limit),
    )(queries, wq, bq.reshape(1, -1), k_all, vwo, bo.reshape(1, -1))


def reference_forward(queries, keys, values, params, *, d_model, d_k, d_v, h):
    """Pure-JAX (f32) replica of the PyTorch forward (dropout = identity)."""
    wq, bq, wk, bk, wv, bv, wo, bo = params
    nq, nk = queries.shape[0], keys.shape[0]
    q = (queries @ wq + bq).reshape(nq, h, d_k).transpose(1, 0, 2)   # (h, nq, d_k)
    k = (keys @ wk + bk).reshape(nk, h, d_k).transpose(1, 2, 0)      # (h, d_k, nk)
    v = (values @ wv + bv).reshape(nk, h, d_v).transpose(1, 0, 2)    # (h, nk, d_v)
    att = jnp.matmul(q, k) / np.sqrt(d_k)
    att = jax.nn.softmax(att, axis=-1)
    out = jnp.matmul(att, v).transpose(1, 0, 2).reshape(nq, h * d_v)
    return out @ wo + bo


if __name__ == "__main__":
    # Lane-aligned small shapes: d_model = h*d_k = h*d_v = 128, 2 query tiles.
    d_model, d_k, d_v, h = 128, 32, 32, 4
    nq, nk = 256, 256

    key = jax.random.PRNGKey(0)
    keys_ = jax.random.split(key, 11)

    # Parameter shapes match the module exactly (Linear stored as (in, out)).
    # Scales are larger than init_weights' std=0.001 so the numerical check
    # against the reference is meaningful.
    wq = 0.05 * jax.random.normal(keys_[0], (d_model, h * d_k), jnp.float32)
    wk = 0.05 * jax.random.normal(keys_[1], (d_model, h * d_k), jnp.float32)
    wv = 0.05 * jax.random.normal(keys_[2], (d_model, h * d_v), jnp.float32)
    wo = 0.05 * jax.random.normal(keys_[3], (h * d_v, d_model), jnp.float32)
    bq = 0.02 * jax.random.normal(keys_[4], (h * d_k,), jnp.float32)
    bk = 0.02 * jax.random.normal(keys_[5], (h * d_k,), jnp.float32)
    bv = 0.02 * jax.random.normal(keys_[6], (h * d_v,), jnp.float32)
    bo = 0.02 * jax.random.normal(keys_[7], (d_model,), jnp.float32)
    params = (wq, bq, wk, bk, wv, bv, wo, bo)

    queries = jax.random.normal(keys_[8], (nq, d_model), jnp.float32)
    keys_in = jax.random.normal(keys_[9], (nk, d_model), jnp.float32)
    values = jax.random.normal(keys_[10], (nk, d_model), jnp.float32)

    out = scaled_dot_product_attention(queries, keys_in, values, params,
                                       d_model=d_model, d_k=d_k, d_v=d_v, h=h,
                                       tq=128, tk=128)
    out = jax.block_until_ready(out)

    ref = reference_forward(queries, keys_in, values, params,
                            d_model=d_model, d_k=d_k, d_v=d_v, h=h)

    assert out.shape == (nq, d_model), out.shape
    # Tolerance covers bf16 MXU inputs (f32 accumulation) and the approximate
    # EUP reciprocal in the softmax denominator, vs. a pure-f32 reference.
    np.testing.assert_allclose(np.asarray(out), np.asarray(ref),
                               rtol=2e-2, atol=5e-3)
    print("KERNEL_OK")
</pallas_src>

<mosaic_0001>
module attributes {stable_mosaic.version = 11 : i64} {
  func.func @_kv_prep_kernel(%arg0: i32, %arg1: memref<128x128xf32, #tpu.memory_space<vmem>>, %arg2: memref<128x128xf32, #tpu.memory_space<vmem>>, %arg3: memref<128x128xf32, #tpu.memory_space<vmem>>, %arg4: memref<1x128xf32, #tpu.memory_space<vmem>>, %arg5: memref<128x128xf32, #tpu.memory_space<vmem>>, %arg6: memref<1x128xf32, #tpu.memory_space<vmem>>, %arg7: memref<128x128xf32, #tpu.memory_space<vmem>>, %arg8: memref<128x128xbf16, #tpu.memory_space<vmem>>, %arg9: memref<4x128x128xbf16, #tpu.memory_space<vmem>>) attributes {dimension_semantics = [#tpu.dimension_semantics<parallel>], iteration_bounds = array<i64: 2>, scalar_prefetch = 0 : i64, scratch_operands = 0 : i64, tpu.core_type = #tpu.core_type<tc>, window_params = [{transform_indices = @transform_0, window_bounds = array<i64: 128, 128>}, {transform_indices = @transform_1, window_bounds = array<i64: 128, 128>}, {pipeline_mode = #tpu.pipeline_mode<synchronous>, transform_indices = @transform_2, window_bounds = array<i64: 128, 128>}, {pipeline_mode = #tpu.pipeline_mode<synchronous>, transform_indices = @transform_3, window_bounds = array<i64: 1, 128>}, {pipeline_mode = #tpu.pipeline_mode<synchronous>, transform_indices = @transform_4, window_bounds = array<i64: 128, 128>}, {pipeline_mode = #tpu.pipeline_mode<synchronous>, transform_indices = @transform_5, window_bounds = array<i64: 1, 128>}, {pipeline_mode = #tpu.pipeline_mode<synchronous>, transform_indices = @transform_6, window_bounds = array<i64: 128, 128>}, {transform_indices = @transform_7, window_bounds = array<i64: 128, 128>}, {transform_indices = @transform_8, window_bounds = array<i64: 4, 128, 128>}]} {
    %c0 = arith.constant 0 : index
    %c0_0 = arith.constant 0 : index
    %0 = vector.load %arg1[%c0, %c0_0] : memref<128x128xf32, #tpu.memory_space<vmem>>, vector<128x128xf32>
    %1 = arith.truncf %0 : vector<128x128xf32> to vector<128x128xbf16>
    %c0_1 = arith.constant 0 : index
    %c0_2 = arith.constant 0 : index
    %2 = vector.load %arg3[%c0_1, %c0_2] : memref<128x128xf32, #tpu.memory_space<vmem>>, vector<128x128xf32>
    %3 = arith.truncf %2 : vector<128x128xf32> to vector<128x128xbf16>
    %cst = arith.constant dense<0.000000e+00> : vector<128x128xf32>
    %4 = tpu.matmul %1, %3, %cst {dimension_numbers = #tpu.dot_dimension_numbers<[1], [0], [0], [1], [0, 0, 1, 1], [], []>} : vector<128x128xbf16>, vector<128x128xbf16>, vector<128x128xf32> -> vector<128x128xf32>
    %c0_3 = arith.constant 0 : index
    %c0_4 = arith.constant 0 : index
    %5 = vector.load %arg4[%c0_3, %c0_4] : memref<1x128xf32, #tpu.memory_space<vmem>>, vector<1x128xf32>
    %6 = vector.broadcast %5 : vector<1x128xf32> to vector<128x128xf32>
    %7 = arith.addf %4, %6 : vector<128x128xf32>
    %8 = arith.truncf %7 : vector<128x128xf32> to vector<128x128xbf16>
    %c0_5 = arith.constant 0 : index
    %c0_6 = arith.constant 0 : index
    %9 = vector.load %arg8[%c0_5, %c0_6] : memref<128x128xbf16, #tpu.memory_space<vmem>>, vector<128x128xbf16>
    tpu.vector_store %arg8[%c0_5, %c0_6], %8 {strides = array<i32>} : memref<128x128xbf16, #tpu.memory_space<vmem>>, vector<128x128xbf16>,
    %c0_7 = arith.constant 0 : index
    %c0_8 = arith.constant 0 : index
    %10 = vector.load %arg2[%c0_7, %c0_8] : memref<128x128xf32, #tpu.memory_space<vmem>>, vector<128x128xf32>
    %11 = arith.truncf %10 : vector<128x128xf32> to vector<128x128xbf16>
    %c0_9 = arith.constant 0 : index
    %c0_10 = arith.constant 0 : index
    %12 = vector.load %arg5[%c0_9, %c0_10] : memref<128x128xf32, #tpu.memory_space<vmem>>, vector<128x128xf32>
    %13 = arith.truncf %12 : vector<128x128xf32> to vector<128x128xbf16>
    %cst_11 = arith.constant dense<0.000000e+00> : vector<128x128xf32>
    %14 = tpu.matmul %11, %13, %cst_11 {dimension_numbers = #tpu.dot_dimension_numbers<[1], [0], [0], [1], [0, 0, 1, 1], [], []>} : vector<128x128xbf16>, vector<128x128xbf16>, vector<128x128xf32> -> vector<128x128xf32>
    %c0_12 = arith.constant 0 : index
    %c0_13 = arith.constant 0 : index
    %15 = vector.load %arg6[%c0_12, %c0_13] : memref<1x128xf32, #tpu.memory_space<vmem>>, vector<1x128xf32>
    %16 = vector.broadcast %15 : vector<1x128xf32> to vector<128x128xf32>
    %17 = arith.addf %14, %16 : vector<128x128xf32>
    %18 = vector.extract_strided_slice %17 {offsets = [0, 0], sizes = [128, 32], strides = [1, 1]} : vector<128x128xf32> to vector<128x32xf32>
    %19 = arith.truncf %18 : vector<128x32xf32> to vector<128x32xbf16>
    %c0_14 = arith.constant 0 : index
    %c0_15 = arith.constant 0 : index
    %20 = vector.load %arg7[%c0_14, %c0_15] : memref<128x128xf32, #tpu.memory_space<vmem>>, vector<32x128xf32>
    %21 = arith.truncf %20 : vector<32x128xf32> to vector<32x128xbf16>
    %cst_16 = arith.constant dense<0.000000e+00> : vector<128x128xf32>
    %22 = tpu.matmul %19, %21, %cst_16 {dimension_numbers = #tpu.dot_dimension_numbers<[1], [0], [0], [1], [0, 0, 1, 1], [], []>} : vector<128x32xbf16>, vector<32x128xbf16>, vector<128x128xf32> -> vector<128x128xf32>
    %23 = arith.truncf %22 : vector<128x128xf32> to vector<128x128xbf16>
    %c0_17 = arith.constant 0 : index
    %c0_18 = arith.constant 0 : index
    %c0_19 = arith.constant 0 : index
    %24 = vector.load %arg9[%c0_17, %c0_18, %c0_19] : memref<4x128x128xbf16, #tpu.memory_space<vmem>>, vector<1x128x128xbf16>
    %25 = vector.shape_cast %24 : vector<1x128x128xbf16> to vector<128x128xbf16>
    %26 = vector.shape_cast %23 : vector<128x128xbf16> to vector<1x128x128xbf16>
    tpu.vector_store %arg9[%c0_17, %c0_18, %c0_19], %26 {strides = array<i32>} : memref<4x128x128xbf16, #tpu.memory_space<vmem>>, vector<1x128x128xbf16>,
    %27 = vector.extract_strided_slice %17 {offsets = [0, 32], sizes = [128, 32], strides = [1, 1]} : vector<128x128xf32> to vector<128x32xf32>
    %28 = arith.truncf %27 : vector<128x32xf32> to vector<128x32xbf16>
    %c32 = arith.constant 32 : index
    %c0_20 = arith.constant 0 : index
    %29 = vector.load %arg7[%c32, %c0_20] : memref<128x128xf32, #tpu.memory_space<vmem>>, vector<32x128xf32>
    %30 = arith.truncf %29 : vector<32x128xf32> to vector<32x128xbf16>
    %cst_21 = arith.constant dense<0.000000e+00> : vector<128x128xf32>
    %31 = tpu.matmul %28, %30, %cst_21 {dimension_numbers = #tpu.dot_dimension_numbers<[1], [0], [0], [1], [0, 0, 1, 1], [], []>} : vector<128x32xbf16>, vector<32x128xbf16>, vector<128x128xf32> -> vector<128x128xf32>
    %32 = arith.truncf %31 : vector<128x128xf32> to vector<128x128xbf16>
    %c1 = arith.constant 1 : index
    %c0_22 = arith.constant 0 : index
    %c0_23 = arith.constant 0 : index
    %33 = vector.load %arg9[%c1, %c0_22, %c0_23] : memref<4x128x128xbf16, #tpu.memory_space<vmem>>, vector<1x128x128xbf16>
    %34 = vector.shape_cast %33 : vector<1x128x128xbf16> to vector<128x128xbf16>
    %35 = vector.shape_cast %32 : vector<128x128xbf16> to vector<1x128x128xbf16>
    tpu.vector_store %arg9[%c1, %c0_22, %c0_23], %35 {strides = array<i32>} : memref<4x128x128xbf16, #tpu.memory_space<vmem>>, vector<1x128x128xbf16>,
    %36 = vector.extract_strided_slice %17 {offsets = [0, 64], sizes = [128, 32], strides = [1, 1]} : vector<128x128xf32> to vector<128x32xf32>
    %37 = arith.truncf %36 : vector<128x32xf32> to vector<128x32xbf16>
    %c64 = arith.constant 64 : index
    %c0_24 = arith.constant 0 : index
    %38 = vector.load %arg7[%c64, %c0_24] : memref<128x128xf32, #tpu.memory_space<vmem>>, vector<32x128xf32>
    %39 = arith.truncf %38 : vector<32x128xf32> to vector<32x128xbf16>
    %cst_25 = arith.constant dense<0.000000e+00> : vector<128x128xf32>
    %40 = tpu.matmul %37, %39, %cst_25 {dimension_numbers = #tpu.dot_dimension_numbers<[1], [0], [0], [1], [0, 0, 1, 1], [], []>} : vector<128x32xbf16>, vector<32x128xbf16>, vector<128x128xf32> -> vector<128x128xf32>
    %41 = arith.truncf %40 : vector<128x128xf32> to vector<128x128xbf16>
    %c2 = arith.constant 2 : index
    %c0_26 = arith.constant 0 : index
    %c0_27 = arith.constant 0 : index
    %42 = vector.load %arg9[%c2, %c0_26, %c0_27] : memref<4x128x128xbf16, #tpu.memory_space<vmem>>, vector<1x128x128xbf16>
    %43 = vector.shape_cast %42 : vector<1x128x128xbf16> to vector<128x128xbf16>
    %44 = vector.shape_cast %41 : vector<128x128xbf16> to vector<1x128x128xbf16>
    tpu.vector_store %arg9[%c2, %c0_26, %c0_27], %44 {strides = array<i32>} : memref<4x128x128xbf16, #tpu.memory_space<vmem>>, vector<1x128x128xbf16>,
    %45 = vector.extract_strided_slice %17 {offsets = [0, 96], sizes = [128, 32], strides = [1, 1]} : vector<128x128xf32> to vector<128x32xf32>
    %46 = arith.truncf %45 : vector<128x32xf32> to vector<128x32xbf16>
    %c96 = arith.constant 96 : index
    %c0_28 = arith.constant 0 : index
    %47 = vector.load %arg7[%c96, %c0_28] : memref<128x128xf32, #tpu.memory_space<vmem>>, vector<32x128xf32>
    %48 = arith.truncf %47 : vector<32x128xf32> to vector<32x128xbf16>
    %cst_29 = arith.constant dense<0.000000e+00> : vector<128x128xf32>
    %49 = tpu.matmul %46, %48, %cst_29 {dimension_numbers = #tpu.dot_dimension_numbers<[1], [0], [0], [1], [0, 0, 1, 1], [], []>} : vector<128x32xbf16>, vector<32x128xbf16>, vector<128x128xf32> -> vector<128x128xf32>
    %50 = arith.truncf %49 : vector<128x128xf32> to vector<128x128xbf16>
    %c3 = arith.constant 3 : index
    %c0_30 = arith.constant 0 : index
    %c0_31 = arith.constant 0 : index
    %51 = vector.load %arg9[%c3, %c0_30, %c0_31] : memref<4x128x128xbf16, #tpu.memory_space<vmem>>, vector<1x128x128xbf16>
    %52 = vector.shape_cast %51 : vector<1x128x128xbf16> to vector<128x128xbf16>
    %53 = vector.shape_cast %50 : vector<128x128xbf16> to vector<1x128x128xbf16>
    tpu.vector_store %arg9[%c3, %c0_30, %c0_31], %53 {strides = array<i32>} : memref<4x128x128xbf16, #tpu.memory_space<vmem>>, vector<1x128x128xbf16>,
    return
  }
  func.func @transform_0(%arg0: i32) -> (i32, i32) {
    %c0_i32 = arith.constant 0 : i32
    %c0_i32_0 = arith.constant 0 : i32
    return %arg0, %c0_i32 : i32, i32
  }
  func.func @transform_1(%arg0: i32) -> (i32, i32) {
    %c0_i32 = arith.constant 0 : i32
    %c0_i32_0 = arith.constant 0 : i32
    return %arg0, %c0_i32 : i32, i32
  }
  func.func @transform_2(%arg0: i32) -> (i32, i32) {
    %c0_i32 = arith.constant 0 : i32
    %c0_i32_0 = arith.constant 0 : i32
    %c0_i32_1 = arith.constant 0 : i32
    return %c0_i32, %c0_i32_0 : i32, i32
  }
  func.func @transform_3(%arg0: i32) -> (i32, i32) {
    %c0_i32 = arith.constant 0 : i32
    %c0_i32_0 = arith.constant 0 : i32
    %c0_i32_1 = arith.constant 0 : i32
    return %c0_i32, %c0_i32_0 : i32, i32
  }
  func.func @transform_4(%arg0: i32) -> (i32, i32) {
    %c0_i32 = arith.constant 0 : i32
    %c0_i32_0 = arith.constant 0 : i32
    %c0_i32_1 = arith.constant 0 : i32
    return %c0_i32, %c0_i32_0 : i32, i32
  }
  func.func @transform_5(%arg0: i32) -> (i32, i32) {
    %c0_i32 = arith.constant 0 : i32
    %c0_i32_0 = arith.constant 0 : i32
    %c0_i32_1 = arith.constant 0 : i32
    return %c0_i32, %c0_i32_0 : i32, i32
  }
  func.func @transform_6(%arg0: i32) -> (i32, i32) {
    %c0_i32 = arith.constant 0 : i32
    %c0_i32_0 = arith.constant 0 : i32
    %c0_i32_1 = arith.constant 0 : i32
    return %c0_i32, %c0_i32_0 : i32, i32
  }
  func.func @transform_7(%arg0: i32) -> (i32, i32) {
    %c0_i32 = arith.constant 0 : i32
    %c0_i32_0 = arith.constant 0 : i32
    return %arg0, %c0_i32 : i32, i32
  }
  func.func @transform_8(%arg0: i32) -> (i32, i32, i32) {
    %c0_i32 = arith.constant 0 : i32
    %c0_i32_0 = arith.constant 0 : i32
    %c0_i32_1 = arith.constant 0 : i32
    return %c0_i32, %arg0, %c0_i32_0 : i32, i32, i32
  }
}

</mosaic_0001>

<bundles_post_ra>
// kernel: tpu_custom_call.1
= control target key start
LH: loop header
LB: loop body
LE: loop exit
PB: predicated region body
PF: predicated region fallthrough
CT: control target
= control target key end

     0   :  { %s3465_s0 = inlined_call_operand.hbm [shape: f32[256,128], index: 0, kind: input, shape index: {}]   ;;  %s3466_s1 = inlined_call_operand.hbm [shape: f32[256,128], index: 1, kind: input, shape index: {}]   ;;  %s3467_s2 = inlined_call_operand.hbm [shape: f32[128,128], index: 2, kind: input, shape index: {}]   ;;  %s3468_s3 = inlined_call_operand.vmem [shape: f32[1,128], index: 3, kind: input, shape index: {}]   ;;  %s3469_s4 = inlined_call_operand.hbm [shape: f32[128,128], index: 4, kind: input, shape index: {}]   ;;  %s3470_s5 = inlined_call_operand.vmem [shape: f32[1,128], index: 5, kind: input, shape index: {}]   ;;  %s3471_s6 = inlined_call_operand.hbm [shape: f32[128,128], index: 6, kind: input, shape index: {}]   ;;  %s3472_s7 = inlined_call_operand.hbm [shape: bf16[256,128], index: 7, kind: output, shape index: {0}]   ;;  %s3473_s8 = inlined_call_operand.hbm [shape: bf16[4,256,128], index: 8, kind: output, shape index: {1}]  }
   0x1   :  { %3484 = sst [smem:[#allocation25_spill]] %s3465_s0 }
   0x2   :  { %3485 = sst [smem:[#allocation26_spill]] %s3467_s2 }
   0x3   :  { %3486 = sst [smem:[#allocation27_spill]] %s3469_s4 }
   0x4   :  { %3487 = sst [smem:[#allocation28_spill]] %s3471_s6 }
   0x5   :  { %14 = vsyncpa [#allocation3], 0 }
   0x6   :  { %16 = vsyncpa [#allocation3 + $0x1], 0 }
   0x7   :  { %17 = vsyncpa [#allocation6], 0 }
   0x8   :  { %19 = vsyncpa [#allocation6 + $0x1], 0 }
   0x9   :  { %20 = vsyncpa [#allocation9], 0 }
   0xa   :  { %21 = vsyncpa [#allocation4], 0 }
   0xb   :  { %23 = vsyncpa [#allocation4 + $0x1], 0 }
   0xc   :  { %24 = vsyncpa [#allocation13], 0 }
   0xd   :  { %26 = vsyncpa [#allocation13 + $0x1], 0  ;;  %s3031_s27 = smov 0   ;;  %s3033_s28 = smov 0  }
   0xe   :  { %s3035_s29 = smov 0   ;;  %s3037_s30 = smov 0  }
   0xf LB: > { %3488 = sst [smem:[#allocation22_spill]] %s2961_s29  ;;  %s3052_s9 = sadd.s32 4294967295, %s2965_s30   ;;  %s2965_s30 = sphi %s3037_s30, %s3511_s30   ;;  %s2961_s29 = sphi %s3035_s29, %s3513_s29   ;;  %s2957_s28 = sphi %s3033_s28, %s3515_s28   ;;  %s2953_s27 = sphi %s3031_s27, %s3514_s27  }
  0x10   : > { %s1917_s10 = sadd.s32 4294967294, %s2965_s30   ;;  %p52_p0 = scmp.ne.s32.totalorder %s2957_s28, %s2953_s27 }
  0x11   : > { %p3474_p1 = scmp.eq.s32.totalorder %s3052_s9, 0  ;;  %p207_p2 = scmp.eq.s32.totalorder %s3052_s9, 1 }
  0x12   : > { %p213_p3 = scmp.eq.s32.totalorder %s1917_s10, 1  ;;  %p1918_p5 = scmp.ge.s32.totalorder %s2965_s30, 1 }
  0x13   : > { %p3061_p4 = por %p3474_p1, %p52_p0  ;;  %p246_p7 = scmp.lt.s32.totalorder %s2965_s30, 3 }
  0x14   : > { %p3066_p6 = por %p213_p3, %p52_p0  ;;  %s2967_s14 = smov [#allocation7]  }
  0x15   : > { %s3489_s11 = scalar_select %p3061_p4, 1, 0 }
  0x16   : > { %s3490_s12 = scalar_select %p3066_p6, 1, 0 }
  0x17   : > { %p3071_p8 = pnand %p1918_p5, %p246_p7  ;;  %s258_s15 = sshll.u32 %s2967_s14, 4  ;;  %s259_s15 = int_to_ptr.vmem [resolvable:$true] %s258_s15 }
  0x18   : > { %s2968_s17 = smov [#allocation8]   ;;  %s2969_s19 = smov [#allocation10]  }
  0x19   : > { %p2671_p9 = pneg %p3071_p8  ;;  %s274_s18 = sshll.u32 %s2968_s17, 4  ;;  %s275_s18 = int_to_ptr.vmem [resolvable:$true] %s274_s18 }
  0x1a   : > { %s290_s20 = sshll.u32 %s2969_s19, 4  ;;  %s2762_s21 = scalar_lea.vmem %s259_s15, 2048  ;;  %s291_s20 = int_to_ptr.vmem [resolvable:$true] %s290_s20 }
  0x1b   : > { %p3080_p11 = pnand %p2671_p9, %p3474_p1  ;;  %p2763_p13 = scmp.ne.s32.totalorder %s259_s15, %s2762_s21 }
  0x1c   : > { %p2770_p5 = scmp.lt.s32.totalorder %s259_s15, %s259_s15  ;;  %p2771_p7 = scmp.lt.s32.totalorder %s2762_s21, %s2762_s21 }
  0x1d   : > { %p2753_p12 = pneg %p3080_p11 }
  0x1e   : > { %p2772_p9 = por %p2771_p7, %p2770_p5 }
  0x1f   : > { %p2765_p0 = pnand %p2763_p13, %p2753_p12 }
  0x21   : > { %p2766_p3 = pneg %p2765_p0 }
  0x23   : > { %p2773_p10 = pnand %p2772_p9, %p2766_p3 }
  0x25   : > { %2776 = shalt.err (!%p2773_p10)
}
  0x26   : > { %s3475_s22 = smov 128   ;;  %s3477_s23 = smov 8  }
  0x27   : > { %s3493_s2 = sld [smem:[#allocation26_spill]]  ;;  %s2788_s26 = scalar_lea.vmem %s275_s18, 2048 }
  0x28   : > { %p2789_p13 = scmp.ne.s32.totalorder %s275_s18, %s2788_s26  ;;  %p2796_p3 = scmp.lt.s32.totalorder %s275_s18, %s275_s18 }
  0x29   : > { %p2797_p10 = scmp.lt.s32.totalorder %s2788_s26, %s2788_s26 }
  0x2a   : > { %p2791_p0 = pnand %p2789_p13, %p2753_p12 }
  0x2b   : > { %p2798_p7 = por %p2797_p10, %p2796_p3 }
  0x2c   : > { %p2792_p5 = pneg %p2791_p0 }
  0x2d   : > { %2674 = dma.hbm_to_vmem [thread:$0]  (!%p3080_p11), %s3493_s2, 2048, %s259_s15, [#allocation6], %s3475_s22, %s3475_s22, %s3477_s23  }
  0x2e   : > { %p2799_p9 = pnand %p2798_p7, %p2792_p5 }
  0x30   : > { %2802 = shalt.err (!%p2799_p9)
}
  0x31   : > { %s3494_s4 = sld [smem:[#allocation27_spill]]  ;;  %s2814_s15 = scalar_lea.vmem %s291_s20, 2048 }
  0x32   : > { %p2815_p1 = scmp.ne.s32.totalorder %s291_s20, %s2814_s15  ;;  %p2822_p3 = scmp.lt.s32.totalorder %s291_s20, %s291_s20 }
  0x33   : > { %p2823_p5 = scmp.lt.s32.totalorder %s2814_s15, %s2814_s15 }
  0x34   : > { %p2817_p13 = pnand %p2815_p1, %p2753_p12 }
  0x35   : > { %p2824_p10 = por %p2823_p5, %p2822_p3 }
  0x36   : > { %p2818_p0 = pneg %p2817_p13 }
  0x37   : > { %2677 = dma.hbm_to_vmem [thread:$0]  (!%p3080_p11), %s3494_s4, 2048, %s275_s18, [#allocation9], %s3475_s22, %s3475_s22, %s3477_s23  }
  0x38   : > { %p2825_p7 = pnand %p2824_p10, %p2818_p0 }
  0x3a   : > { %2828 = shalt.err (!%p2825_p7)
}
  0x3b   : > { %s3495_s6 = sld [smem:[#allocation28_spill]]  ;;  %s3120_s18 = sadd.s32 1, %s2965_s30  }
  0x3c   : > { %3496 = sst [smem:[#allocation23_spill]] %s3120_s18  ;;  %s36_s16 = ssub.s32 %s2965_s30, %s3120_s18 }
  0x3d   : > { %s39_s21 = sadd.s32 1, %s2961_s29  ;;  %p37_p1 = scmp.eq.s32.totalorder %s36_s16, 0 }
  0x3e   : > { %p46_p12 = scmp.ne.s32.totalorder %s2961_s29, %s2957_s28  ;;  %p47_p9 = scmp.eq.s32.totalorder %s2965_s30, 0 }
  0x3f   : > { %p2698_p13 = scmp.lt.s32.totalorder %s2965_s30, 2  ;;  %s304_s26 = sand.u32 1, %s2961_s29  }
  0x40   : > { %s3130_s24 = scalar_select %p37_p1, %s2961_s29, %s39_s21  }
  0x41   : > { %2680 = dma.hbm_to_vmem [thread:$0]  (!%p3080_p11), %s3495_s6, 2048, %s291_s20, [#allocation9], %s3475_s22, %s3475_s22, %s3477_s23  }
  0x42   : > { %3497 = sst [smem:[#allocation24_spill]] %s3130_s24  ;;  %p48_p0 = por %p47_p9, %p46_p12 }
  0x43   : > { %p3134_p3 = por %p207_p2, %p46_p12  ;;  %s2107_s10 = sshll.u32 %s2965_s30, 11 }
  0x44   : > { %s3140_s20 = sshll.u32 %s304_s26, 7  ;;  %s3499_s0 = sld [smem:[#allocation25_spill]] }
  0x45   : > { %s3498_s25 = scalar_select %p3134_p3, 1, 0 }
  0x46   : > { %s308_s19 = scalar_lea.vmem [#allocation2], %s3140_s20  ;;  %p3148_p11 = pnand %p2698_p13, %p48_p0 }
  0x47   : > { %s315_s16 = sshll.u32 %s308_s19, 4  ;;  %s3157_s14 = scalar_lea.hbm %s3466_s1, %s2107_s10  ;;  %s3152_s16 = int_to_ptr.vmem [resolvable:$true] %s315_s16 }
  0x48   : > { %s3159_s15 = scalar_lea.sflag [#allocation3], %s304_s26  ;;  %p2831_p5 = pneg %p3148_p11 }
  0x4a   : > { %s3145_s17 = scalar_lea.hbm %s3499_s0, %s2107_s10  ;;  %s2834_s6 = scalar_lea.hbm %s3499_s0, 4096 }
  0x4b   : > { %s2829_s2 = scalar_lea.hbm %s3145_s17, 2048  ;;  %p2835_p1 = scmp.lt.s32.totalorder %s3145_s17, %s3499_s0 }
  0x4c   : > { %p2830_p2 = scmp.ne.s32.totalorder %s3145_s17, %s2829_s2  ;;  %p2836_p12 = scmp.lt.s32.totalorder %s2834_s6, %s2829_s2 }
  0x4e   : > { %p2832_p10 = pnand %p2831_p5, %p2830_p2  ;;  %p2837_p9 = por %p2836_p12, %p2835_p1 }
  0x50   : > { %p2833_p7 = pneg %p2832_p10 }
  0x52   : > { %p2838_p13 = pnand %p2837_p9, %p2833_p7 }
  0x54   : > { %2841 = shalt.err (!%p2838_p13)
}
  0x55   : > { %s2842_s22 = scalar_lea.vmem %s3152_s16, 2048  ;;  %s2972_s4 = smov [#allocation2]  }
  0x56   : > { %p2843_p0 = scmp.ne.s32.totalorder %s3152_s16, %s2842_s22  ;;  %s2847_s23 = sshll.u32 %s2972_s4, 4  ;;  %s2848_s23 = int_to_ptr.vmem [resolvable:$false] %s2847_s23 }
  0x57   : > { %s2849_s26 = scalar_lea.vmem %s2848_s23, 4096  ;;  %p2850_p6 = scmp.lt.s32.totalorder %s3152_s16, %s2848_s23 }
  0x58   : > { %p2845_p2 = pnand %p2843_p0, %p2831_p5  ;;  %p2851_p3 = scmp.lt.s32.totalorder %s2849_s26, %s2842_s22 }
  0x5a   : > { %p2846_p10 = pneg %p2845_p2  ;;  %p2852_p4 = por %p2851_p3, %p2850_p6 }
  0x5c   : > { %p2853_p1 = pnand %p2852_p4, %p2846_p10 }
  0x5e   : > { %2856 = shalt.err (!%p2853_p1)
}
  0x5f   : > { %s3501_s2 = smov 8   ;;  %s3502_s6 = smov 128  }
  0x60   : > { %2684 = dma.hbm_to_vmem [thread:$0]  (!%p3148_p11), %s3145_s17, 2048, %s3152_s16, %s3159_s15, %s3502_s6, %s3502_s6, %s3501_s2  }
  0x61   : > { %s329_s29 = scalar_lea.vmem [#allocation5], %s3140_s20  ;;  %s325_s10 = sand.u32 1, %s2965_s30  }
  0x62   : > { %s336_s24 = sshll.u32 %s329_s29, 4  ;;  %s326_s19 = scalar_lea.sflag [#allocation6], %s325_s10  ;;  %s3191_s24 = int_to_ptr.vmem [resolvable:$true] %s336_s24 }
  0x63   : > { %s2857_s22 = scalar_lea.hbm %s3157_s14, 2048  ;;  %s2862_s26 = scalar_lea.hbm %s3466_s1, 4096 }
  0x64   : > { %p2858_p4 = scmp.ne.s32.totalorder %s3157_s14, %s2857_s22  ;;  %p2863_p7 = scmp.lt.s32.totalorder %s3157_s14, %s3466_s1 }
  0x65   : > { %p2864_p12 = scmp.lt.s32.totalorder %s2862_s26, %s2857_s22 }
  0x66   : > { %p2860_p6 = pnand %p2858_p4, %p2831_p5 }
  0x67   : > { %p2865_p9 = por %p2864_p12, %p2863_p7 }
  0x68   : > { %p2861_p3 = pneg %p2860_p6 }
  0x6a   : > { %p2866_p13 = pnand %p2865_p9, %p2861_p3 }
  0x6c   : > { %2869 = shalt.err (!%p2866_p13)
}
  0x6d   : > { %s2870_s20 = scalar_lea.vmem %s3191_s24, 2048  ;;  %s2973_s17 = smov [#allocation5]  }
  0x6e   : > { %p2871_p0 = scmp.ne.s32.totalorder %s3191_s24, %s2870_s20  ;;  %s2875_s16 = sshll.u32 %s2973_s17, 4  ;;  %s2876_s16 = int_to_ptr.vmem [resolvable:$false] %s2875_s16 }
  0x6f   : > { %s2877_s15 = scalar_lea.vmem %s2876_s16, 4096  ;;  %p2878_p1 = scmp.lt.s32.totalorder %s3191_s24, %s2876_s16 }
  0x70   : > { %p2873_p2 = pnand %p2871_p0, %p2831_p5  ;;  %p2879_p4 = scmp.lt.s32.totalorder %s2877_s15, %s2870_s20 }
  0x72   : > { %p2874_p10 = pneg %p2873_p2  ;;  %p2880_p6 = por %p2879_p4, %p2878_p1 }
  0x74   : > { %p2881_p7 = pnand %p2880_p6, %p2874_p10 }
  0x76   : > { %2884 = shalt.err (!%p2881_p7)
}
  0x77   : > { %2687 = dma.hbm_to_vmem [thread:$0]  (!%p3148_p11), %s3157_s14, 2048, %s3191_s24, %s326_s19, %s3502_s6, %s3502_s6, %s3501_s2  }
  0x78   : > { %348 = sbr.rel (%p3071_p8) target bundleno = 759 (0x2f7), region = 48  ;;  %s3221_s0 = sand.u32 (!%p3071_p8), 1, %s2957_s28  }
  0x79   : > { %s1930_s18 = sshll.u32 (!%p3071_p8), %s3221_s0, 7  ;;  %s351_s29 = scalar_lea.sflag (!%p3071_p8), [#allocation3], %s3221_s0 }
  0x7a   : > { %s3225_s10 = scalar_lea.vmem (!%p3071_p8), [#allocation2], %s1930_s18  ;;  %p3503_p5 = scmp.ne.s32.totalorder (!%p3071_p8), %s3489_s11, 0 }
  0x7d   : > { %2928 = dma.done.wait (%p3503_p5), %s351_s29, 2048  }
  0x7e   : > { %2930 = vsyncadd (%p3503_p5), %s351_s29, 4294965248  ;;  %s359_s21 = sand.u32 1, %s3052_s9   ;;  %s3232_s14 = scalar_lea.vmem [#allocation5], %s1930_s18 }
  0x7f   : > { %s360_s13 = scalar_lea.sflag [#allocation6], %s359_s21 }
  0x80   : > { %2932 = dma.done.wait (%p3503_p5), %s360_s13, 2048  }
  0x81   : > { %2934 = vsyncadd (%p3503_p5), %s360_s13, 4294965248  ;;  %p3504_p8 = scmp.eq.s32.totalorder %s3052_s9, 0 }
  0x83   : > { %2936 = dma.done.wait (%p3504_p8), [#allocation6], 2048   ;;  %p3505_p11 = pmov %p3504_p8 }
  0x84   : > { %p3506_p3 = pmov %p3504_p8 }
  0x85   : > { %2938 = vsyncadd (%p3505_p11), [#allocation6], 4294965248 }
  0x86   : > { %2940 = dma.done.wait (%p3506_p3), [#allocation9], 4096   ;;  %p3507_p12 = pmov %p3506_p3 }
  0x87   : > { %v693_v0 = vld [vmem:[#allocation8 + $0x70] sm:$0xff]  ;;  %v694_v1 = vld [vmem:[#allocation8 + $0x78] sm:$0xff]  ;;  %v691_v2 = vld [vmem:[#allocation8 + $0x60] sm:$0xff]  ;;  %vm821_vm0 = vcmask 261120   ;;  %s2974_s6 = smov 96   ;;  %s2975_s24 = smov 32  }
  0x88   : > { %2942 = vsyncadd (%p3507_p12), [#allocation9], 4294963200  ;;  %v702_v3 = vpack.c.bf16 %v694_v1, %v693_v0  ;;  %v692_v4 = vld [vmem:[#allocation8 + $0x68] sm:$0xff]  ;;  %v689_v6 = vld [vmem:[#allocation8 + $0x50] sm:$0xff]  ;;  %s2976_s19 = smov 64   ;;  %s1935_s23 = sshll.u32 %s3221_s0, 6 }
  0x89   : > { %v701_v5 = vpack.c.bf16 %v692_v4, %v691_v2  ;;  %v690_v7 = vld [vmem:[#allocation8 + $0x58] sm:$0xff]  ;;  %v655_v9 = vld [vmem:[%s3232_s14] sm:$0xff]  ;;  %v656_v10 = vld [vmem:[%s3232_s14 + $0x8] sm:$0xff]  ;;  %s3312_s26 = scalar_lea.vmem [#allocation11], %s1935_s23  ;;  %s1936_s20 = sshll.u32 %s3221_s0, 8 }
  0x8a   : > { %2533 = vmatprep.subr.bf16.mxu1 %v702_v3  ;;  %v700_v8 = vpack.c.bf16 %v690_v7, %v689_v6  ;;  %v687_v11 = vld [vmem:[#allocation8 + $0x40] sm:$0xff]  ;;  %v688_v12 = vld [vmem:[#allocation8 + $0x48] sm:$0xff]  ;;  %v671_v13 = vpack.c.bf16 %v656_v10, %v655_v9  ;;  %v685_v15 = vld [vmem:[#allocation8 + $0x30] sm:$0xff]  ;;  %s3356_s17 = scalar_lea.vmem [#allocation12], %s1936_s20  ;;  %s1722_s16 = sshll.u32 %s3312_s26, 4  ;;  %s3367_s16 = int_to_ptr.vmem [resolvable:$true] %s1722_s16 }
  0x8b   : > { %2534 = vmatpush3.bf16.msra.mxu1 %v702_v3  ;;  %v699_v14 = vpack.c.bf16 %v688_v12, %v687_v11  ;;  %v686_v16 = vld [vmem:[#allocation8 + $0x38] sm:$0xff]  ;;  %v461_v17 = vld [vmem:[#allocation7 + $0x70] sm:$0xff]  ;;  %v459_v19 = vld [vmem:[#allocation7 + $0x60] sm:$0xff]  ;;  %s2189_s15 = sshll.u32 %s3052_s9, 10  ;;  %s1704_s21 = scalar_lea.sflag [#allocation4], %s3221_s0 }
  0x8c   : > { %2535 = vmatprep.subr.bf16.mxu1 %v701_v5  ;;  %2549 = vmatprep.mubr.bf16.mxu1 %v671_v13  ;;  %v462_v18 = vld [vmem:[#allocation7 + $0x78] sm:$0xff]  ;;  %v460_v20 = vld [vmem:[#allocation7 + $0x68] sm:$0xff]  ;;  %v698_v23 = vpack.c.bf16 %v686_v16, %v685_v15  ;;  %v457_v24 = vld [vmem:[#allocation7 + $0x50] sm:$0xff]  ;;  %s2885_s13 = scalar_lea.vmem %s3367_s16, 1024  ;;  %p3508_p13 = scmp.ne.s32.totalorder %s3498_s25, 0 }
  0x8d   : > { %v470_v21 = vpack.c.bf16 %v462_v18, %v461_v17  ;;  %v469_v22 = vpack.c.bf16 %v460_v20, %v459_v19  ;;  %v458_v25 = vld [vmem:[#allocation7 + $0x58] sm:$0xff]  ;;  %v683_v26 = vld [vmem:[#allocation8 + $0x20] sm:$0xff]  ;;  %v684_v27 = vld [vmem:[#allocation8 + $0x28] sm:$0xff]  ;;  %p2886_p9 = scmp.ne.s32.totalorder %s3367_s16, %s2885_s13 }
  0x8e   : > { %v468_v28 = vpack.c.bf16 %v458_v25, %v457_v24  ;;  %v423_v29 = vld [vmem:[%s3225_s10] sm:$0xff]  ;;  %v424_v30 = vld [vmem:[%s3225_s10 + $0x8] sm:$0xff]  ;;  %v697_v31 = vpack.c.bf16 %v684_v27, %v683_v26  ;;  %v681_v35 = vld [vmem:[#allocation8 + $0x10] sm:$0xff] }
  0x8f   : > { %2536 = vmatpush3.bf16.msra.mxu1 %v701_v5  ;;  %2501 = vmatprep.subr.bf16.mxu0 %v470_v21  ;;  %v455_v32 = vld [vmem:[#allocation7 + $0x40] sm:$0xff]  ;;  %v456_v33 = vld [vmem:[#allocation7 + $0x48] sm:$0xff]  ;;  %v439_v34 = vpack.c.bf16 %v424_v30, %v423_v29  ;;  %v682_v36 = vld [vmem:[#allocation8 + $0x18] sm:$0xff]  ;;  %p2887_p0 = pnand %p2886_p9, %p3508_p13 }
  0x90   : > { %2537 = vmatprep.subr.bf16.mxu1 %v700_v8  ;;  %2502 = vmatpush3.bf16.msra.mxu0 %v470_v21  ;;  %v467_v37 = vpack.c.bf16 %v456_v33, %v455_v32  ;;  %v696_v38 = vpack.c.bf16 %v682_v36, %v681_v35  ;;  %v453_v39 = vld [vmem:[#allocation7 + $0x30] sm:$0xff]  ;;  %v454_v40 = vld [vmem:[#allocation7 + $0x38] sm:$0xff]  ;;  %v679_v41 = vld [vmem:[#allocation8] sm:$0xff] }
  0x91   : > { %2503 = vmatprep.subr.bf16.mxu0 %v469_v22  ;;  %2517 = vmatprep.mubr.bf16.mxu0 %v439_v34  ;;  %v680_v42 = vld [vmem:[#allocation8 + $0x8] sm:$0xff]  ;;  %v466_v43 = vpack.c.bf16 %v454_v40, %v453_v39  ;;  %v451_v45 = vld [vmem:[#allocation7 + $0x20] sm:$0xff]  ;;  %v657_v47 = vld [vmem:[%s3232_s14 + $0x10] sm:$0xff]  ;;  %p2888_p2 = pneg %p2887_p0 }
  0x92   : > { %v695_v44 = vpack.c.bf16 %v680_v42, %v679_v41  ;;  %v452_v46 = vld [vmem:[#allocation7 + $0x28] sm:$0xff]  ;;  %v658_v48 = vld [vmem:[%s3232_s14 + $0x18] sm:$0xff]  ;;  %v659_v49 = vld [vmem:[%s3232_s14 + $0x20] sm:$0xff] }
  0x93   : > { %2538 = vmatpush3.bf16.msra.mxu1 %v700_v8  ;;  %v465_v50 = vpack.c.bf16 %v452_v46, %v451_v45  ;;  %v660_v51 = vld [vmem:[%s3232_s14 + $0x28] sm:$0xff]  ;;  %v449_v52 = vld [vmem:[#allocation7 + $0x10] sm:$0xff]  ;;  %v450_v53 = vld [vmem:[#allocation7 + $0x18] sm:$0xff]  ;;  %v672_v54 = vpack.c.bf16 %v658_v48, %v657_v47 }
  0x94   : > { %2539 = vmatprep.subr.bf16.mxu1 %v699_v14  ;;  %2504 = vmatpush3.bf16.msra.mxu0 %v469_v22  ;;  %v673_v55 = vpack.c.bf16 %v660_v51, %v659_v49  ;;  %v464_v56 = vpack.c.bf16 %v450_v53, %v449_v52  ;;  %v447_v57 = vld [vmem:[#allocation7] sm:$0xff]  ;;  %v448_v58 = vld [vmem:[#allocation7 + $0x8] sm:$0xff]  ;;  %v661_v59 = vld [vmem:[%s3232_s14 + $0x30] sm:$0xff] }
  0x95   : > { %2505 = vmatprep.subr.bf16.mxu0 %v468_v28  ;;  %v662_v60 = vld [vmem:[%s3232_s14 + $0x38] sm:$0xff]  ;;  %v463_v61 = vpack.c.bf16 %v448_v58, %v447_v57  ;;  %v663_v62 = vld [vmem:[%s3232_s14 + $0x40] sm:$0xff]  ;;  %v664_v63 = vld [vmem:[%s3232_s14 + $0x48] sm:$0xff] }
  0x96   : > { %v674_v0 = vpack.c.bf16 %v662_v60, %v661_v59  ;;  %v425_v1 = vld [vmem:[%s3225_s10 + $0x10] sm:$0xff]  ;;  %v426_v2 = vld [vmem:[%s3225_s10 + $0x18] sm:$0xff]  ;;  %v675_v3 = vpack.c.bf16 %v664_v63, %v663_v62  ;;  %v427_v4 = vld [vmem:[%s3225_s10 + $0x20] sm:$0xff] }
  0x97   : > { %2540 = vmatpush3.bf16.msra.mxu1 %v699_v14  ;;  %v428_v5 = vld [vmem:[%s3225_s10 + $0x28] sm:$0xff]  ;;  %v440_v6 = vpack.c.bf16 %v426_v2, %v425_v1  ;;  %v665_v8 = vld [vmem:[%s3232_s14 + $0x50] sm:$0xff]  ;;  %v666_v9 = vld [vmem:[%s3232_s14 + $0x58] sm:$0xff] }
  0x98   : > { %2541 = vmatprep.subr.bf16.mxu1 %v698_v23  ;;  %2506 = vmatpush3.bf16.msra.mxu0 %v468_v28  ;;  %v441_v7 = vpack.c.bf16 %v428_v5, %v427_v4  ;;  %v667_v10 = vld [vmem:[%s3232_s14 + $0x60] sm:$0xff]  ;;  %v668_v11 = vld [vmem:[%s3232_s14 + $0x68] sm:$0xff]  ;;  %v676_v12 = vpack.c.bf16 %v666_v9, %v665_v8  ;;  %v429_v13 = vld [vmem:[%s3225_s10 + $0x30] sm:$0xff] }
  0x99   : > { %2507 = vmatprep.subr.bf16.mxu0 %v467_v37  ;;  %v430_v14 = vld [vmem:[%s3225_s10 + $0x38] sm:$0xff]  ;;  %v677_v15 = vpack.c.bf16 %v668_v11, %v667_v10  ;;  %v431_v16 = vld [vmem:[%s3225_s10 + $0x40] sm:$0xff]  ;;  %v432_v17 = vld [vmem:[%s3225_s10 + $0x48] sm:$0xff] }
  0x9a   : > { %v442_v18 = vpack.c.bf16 %v430_v14, %v429_v13  ;;  %v443_v19 = vpack.c.bf16 %v432_v17, %v431_v16  ;;  %v669_v20 = vld [vmem:[%s3232_s14 + $0x70] sm:$0xff]  ;;  %v670_v21 = vld [vmem:[%s3232_s14 + $0x78] sm:$0xff]  ;;  %v435_v26 = vld [vmem:[%s3225_s10 + $0x60] sm:$0xff]  ;;  %s2977_s14 = smov [#allocation11]  }
  0x9b   : > { %2542 = vmatpush3.bf16.msra.mxu1 %v698_v23  ;;  %v678_v22 = vpack.c.bf16 %v670_v21, %v669_v20  ;;  %v433_v23 = vld [vmem:[%s3225_s10 + $0x50] sm:$0xff]  ;;  %v434_v24 = vld [vmem:[%s3225_s10 + $0x58] sm:$0xff]  ;;  %v436_v27 = vld [vmem:[%s3225_s10 + $0x68] sm:$0xff]  ;;  %s2889_s11 = sshll.u32 %s2977_s14, 4  ;;  %s2890_s11 = int_to_ptr.vmem [resolvable:$false] %s2889_s11 }
  0x9c   : > { %2543 = vmatprep.subr.bf16.mxu1 %v697_v31  ;;  %2508 = vmatpush3.bf16.msra.mxu0 %v467_v37  ;;  %v444_v25 = vpack.c.bf16 %v434_v24, %v433_v23  ;;  %v445_v28 = vpack.c.bf16 %v436_v27, %v435_v26  ;;  %v437_v29 = vld [vmem:[%s3225_s10 + $0x70] sm:$0xff]  ;;  %v438_v30 = vld [vmem:[%s3225_s10 + $0x78] sm:$0xff]  ;;  %v815_v35 = vld [vmem:[#allocation10] sm:$0xff]  ;;  %s3375_s10 = scalar_lea.hbm %s3472_s7, %s2189_s15  ;;  %s2891_s2 = scalar_lea.vmem %s2890_s11, 2048 }
  0x9d   : > { %2509 = vmatprep.subr.bf16.mxu0 %v466_v43  ;;  %v446_v32 = vpack.c.bf16 %v438_v30, %v437_v29  ;;  %v818_v33 = vld [vmem:[#allocation10 + $0x18] sm:$0xff]  ;;  %v816_v36 = vld [vmem:[#allocation10 + $0x8] sm:$0xff]  ;;  %v1023_v40 = vld [vmem:[#allocation10 + $0x20] sm:$0xff]  ;;  %p2892_p10 = scmp.lt.s32.totalorder %s3367_s16, %s2890_s11  ;;  %p2893_p1 = scmp.lt.s32.totalorder %s2891_s2, %s2885_s13 }
  0x9e   : > { %v819_v37 = vpack.c.bf16 %v816_v36, %v815_v35  ;;  %v1026_v39 = vld [vmem:[#allocation10 + $0x38] sm:$0xff]  ;;  %v1024_v42 = vld [vmem:[#allocation10 + $0x28] sm:$0xff]  ;;  %v1257_v48 = vld [vmem:[#allocation10 + $0x50] sm:$0xff] }
  0x9f   : > { %2544 = vmatpush3.bf16.msra.mxu1 %v697_v31  ;;  %v817_v31 = vld [vmem:[#allocation10 + $0x10] sm:$0xff]  ;;  %v1482_v45 = vld [vmem:[#allocation10 + $0x78] sm:$0xff]  ;;  %v1954_v53 = vld [vmem:[%s3470_s5] ss:$0 sm:$0xff]  ;;  %p2894_p4 = por %p2893_p1, %p2892_p10 }
  0xa0   : > { %2545 = vmatprep.subr.bf16.mxu1 %v696_v38  ;;  %2510 = vmatpush3.bf16.msra.mxu0 %v466_v43  ;;  %v820_v34 = vpack.c.bf16 %v818_v33, %v817_v31  ;;  %v1027_v43 = vpack.c.bf16 %v1024_v42, %v1023_v40  ;;  %v1258_v49 = vld [vmem:[#allocation10 + $0x58] sm:$0xff]  ;;  %v1255_v2 = vld [vmem:[#allocation10 + $0x40] sm:$0xff] }
  0xa1   : > { %2511 = vmatprep.subr.bf16.mxu0 %v465_v50  ;;  %v1260_v51 = vpack.c.bf16 %v1258_v49, %v1257_v48  ;;  %v1937_v31 = vld [vmem:[%s3468_s3] ss:$0 sm:$0xff]  ;;  %p2895_p6 = pnand %p2894_p4, %p2888_p2 }
  0xa3   : > { %2546 = vmatpush3.bf16.msra.mxu1 %v696_v38  ;;  %v1025_v38 = vld [vmem:[#allocation10 + $0x30] sm:$0xff] }
  0xa4   : > { %2547 = vmatprep.subr.bf16.mxu1 %v695_v44  ;;  %2512 = vmatpush3.bf16.msra.mxu0 %v465_v50  ;;  %v1028_v41 = vpack.c.bf16 %v1026_v39, %v1025_v38 }
  0xa5   : > { %2513 = vmatprep.subr.bf16.mxu0 %v464_v56 }
  0xa7   : > { %2548 = vmatpush3.bf16.msra.mxu1 %v695_v44  ;;  %v1481_v44 = vld [vmem:[#allocation10 + $0x70] sm:$0xff] }
  0xa8   : > { %2514 = vmatpush3.bf16.msra.mxu0 %v464_v56  ;;  %2585 = vmatprep.subr.bf16.mxu1 %v1028_v41  ;;  %v3278_v46 = vpack.c.bf16 %v1482_v45, %v1481_v44 }
  0xa9   : > { %2515 = vmatprep.subr.bf16.mxu0 %v463_v61 }
  0xaa   : > { %2550 = vmatmul.mubr.bf16.vlgmr.msra.gmra.mxu1 %v672_v54 }
  0xab   : > { %2553 = vmatprep.mubr.bf16.mxu1 %v673_v55  ;;  %2586 = vmatpush3.bf16.msra.mxu1 %v1028_v41 }
  0xac   : > { %2516 = vmatpush3.bf16.msra.mxu0 %v463_v61  ;;  %2587 = vmatprep.subr.bf16.mxu1 %v1027_v43 }
  0xad   : > { %2565 = vmatprep.subr.bf16.mxu0 %v820_v34 }
  0xaf   : > { %2518 = vmatmul.mubr.bf16.vlgmr.msra.gmra.mxu0 %v440_v6  ;;  %2588 = vmatpush3.bf16.msra.mxu1 %v1027_v43 }
  0xb0   : > { %2521 = vmatprep.mubr.bf16.mxu0 %v441_v7  ;;  %2566 = vmatpush3.bf16.msra.mxu0 %v820_v34 }
  0xb1   : > { %2567 = vmatprep.subr.bf16.mxu0 %v819_v37  ;;  %2625 = vmatprep.subr.bf16.mxu1 %v3278_v46 }
  0xb2   : > { %2554 = vmatmul.mubr.bf16.gmra.mxu1 %v674_v0 }
  0xb3   : > { %2557 = vmatprep.mubr.bf16.mxu1 %v675_v3  ;;  %v1256_v3 = vld [vmem:[#allocation10 + $0x48] sm:$0xff] }
  0xb4   : > { %2568 = vmatpush3.bf16.msra.mxu0 %v819_v37  ;;  %v1259_v6 = vpack.c.bf16 %v1256_v3, %v1255_v2 }
  0xb5   : > { %2605 = vmatprep.subr.bf16.mxu0 %v1260_v51 }
  0xb7   : > { %2522 = vmatmul.mubr.bf16.gmra.mxu0 %v442_v18 }
  0xb8   : > { %2525 = vmatprep.mubr.bf16.mxu0 %v443_v19 }
  0xba   : > { %2558 = vmatmul.mubr.bf16.gmra.mxu1 %v676_v12 }
  0xbb   : > { %2561 = vmatprep.mubr.bf16.mxu1 %v677_v15 }
  0xbf   : > { %2526 = vmatmul.mubr.bf16.gmra.mxu0 %v444_v25 }
  0xc0   : > { %2529 = vmatprep.mubr.bf16.mxu0 %v445_v28 }
  0xc2   : > { %2562 = vmatmul.mubr.bf16.gmra.mxu1 %v678_v22 }
  0xc7   : > { %2530 = vmatmul.mubr.bf16.gmra.mxu0 %v446_v32 }
 0x16a   : > { %v2551_v47 = vpop.f32.mrf.mxu1 }
 0x16b   : > { %v753_v58 = vadd.f32 %v2551_v47, %v1954_v53 }
 0x16c   : > { %v744_v50 = vpop.f32.mrf.mxu1 }
 0x16d   : > { %v745_v56 = vadd.f32 %v1954_v53, %v744_v50 }
 0x16e   : > { %v2552_v52 = vpop.f32.mrf.mxu1 }
 0x16f   : > { %v756_v54 = vadd.f32 %v2552_v52, %v1954_v53  ;;  %v2519_v30 = vpop.f32.mrf.mxu0 }
 0x170   : > { %v747_v55 = vpop.f32.mrf.mxu1  ;;  %v521_v33 = vadd.f32 %v2519_v30, %v1937_v31 }
 0x171   : > { %v748_v57 = vadd.f32 %v1954_v53, %v747_v55  ;;  %v808_v61 = vpack.c.bf16 %v756_v54, %v753_v58  ;;  %v512_v32 = vpop.f32.mrf.mxu0 }
 0x172   : > { %v2555_v59 = vpop.f32.mrf.mxu1  ;;  %v513_v35 = vadd.f32 %v1937_v31, %v512_v32 }
 0x173   : > { %v807_v60 = vpack.c.bf16 %v748_v57, %v745_v56  ;;  %v769_v7 = vadd.f32 %v2555_v59, %v1954_v53  ;;  %v2520_v34 = vpop.f32.mrf.mxu0 }
 0x174   : > { %v760_v62 = vpop.f32.mrf.mxu1  ;;  %v524_v36 = vadd.f32 %v2520_v34, %v1937_v31 }
 0x175   : > { %1037 = vrot.lane.b32.xlu0 %v807_v60, %s2974_s6  ;;  %2569 = vmatprep.mubr.msk.bf16.mxu0 %vm821_vm0, %v807_v60  ;;  %v761_v4 = vadd.f32 %v1954_v53, %v760_v62  ;;  %v515_v37 = vpop.f32.mrf.mxu0 }
 0x176   : > { %v2556_v63 = vpop.f32.mrf.mxu1  ;;  %2570 = vmatmul.mubr.msk.bf16.vlgmr.msra.gmra.mxu0 %vm821_vm0, %v808_v61  ;;  %v2199_v38 = vpack.c.bf16 %v524_v36, %v521_v33  ;;  %v516_v39 = vadd.f32 %v1937_v31, %v515_v37 }
 0x177   : > { %2606 = vmatpush3.bf16.msra.mxu0 %v1260_v51  ;;  %v772_v0 = vadd.f32 %v2556_v63, %v1954_v53  ;;  %v2523_v40 = vpop.f32.mrf.mxu0 }
 0x178   : > { %v763_v1 = vpop.f32.mrf.mxu1  ;;  %2607 = vmatprep.subr.bf16.mxu0 %v1259_v6  ;;  %2391 = vst [vmem:[%s3312_s26 + $0x8] sm:$0xff] %v2199_v38   ;;  %v2194_v41 = vpack.c.bf16 %v516_v39, %v513_v35  ;;  %v537_v43 = vadd.f32 %v2523_v40, %v1937_v31 }
 0x179   : > { %v764_v5 = vadd.f32 %v1954_v53, %v763_v1  ;;  %1039 = vrot.lane.b32.xlu0 %v808_v61, %s2974_s6  ;;  %v810_v10 = vpack.c.bf16 %v772_v0, %v769_v7  ;;  %v528_v42 = vpop.f32.mrf.mxu0 }
 0x17a   : > { %v2559_v8 = vpop.f32.mrf.mxu1  ;;  %2195 = vst [vmem:[%s3312_s26] sm:$0xff] %v2194_v41   ;;  %v529_v45 = vadd.f32 %v1937_v31, %v528_v42 }
 0x17b   : > { %v809_v9 = vpack.c.bf16 %v764_v5, %v761_v4  ;;  %2608 = vmatpush3.bf16.msra.mxu0 %v1259_v6  ;;  %v785_v13 = vadd.f32 %v2559_v8, %v1954_v53  ;;  %v2524_v44 = vpop.f32.mrf.mxu0 }
 0x17c   : > { %v776_v11 = vpop.f32.mrf.mxu1  ;;  %v540_v47 = vadd.f32 %v2524_v44, %v1937_v31 }
 0x17d   : > { %1041 = vrot.lane.b32.xlu1 %v809_v9, %s2974_s6  ;;  %2573 = vmatprep.mubr.msk.bf16.mxu0 %vm821_vm0, %v809_v9  ;;  %v777_v16 = vadd.f32 %v1954_v53, %v776_v11  ;;  %v531_v48 = vpop.f32.mrf.mxu0 }
 0x17e   : > { %v2560_v12 = vpop.f32.mrf.mxu1  ;;  %2574 = vmatmul.mubr.msk.bf16.gmra.mxu0 %vm821_vm0, %v810_v10  ;;  %v2209_v49 = vpack.c.bf16 %v540_v47, %v537_v43  ;;  %v532_v50 = vadd.f32 %v1937_v31, %v531_v48 }
 0x17f   : > { %v788_v14 = vadd.f32 %v2560_v12, %v1954_v53  ;;  %v2527_v51 = vpop.f32.mrf.mxu0 }
 0x180   : > { %v779_v15 = vpop.f32.mrf.mxu1  ;;  %2393 = vst [vmem:[%s3312_s26 + $0x18] sm:$0xff] %v2209_v49   ;;  %v2204_v52 = vpack.c.bf16 %v532_v50, %v529_v45  ;;  %v553_v54 = vadd.f32 %v2527_v51, %v1937_v31 }
 0x181   : > { %v780_v17 = vadd.f32 %v1954_v53, %v779_v15  ;;  %1043 = vrot.lane.b32.xlu1 %v810_v10, %s2974_s6  ;;  %v812_v19 = vpack.c.bf16 %v788_v14, %v785_v13 }
 0x182   : > { %v2563_v18 = vpop.f32.mrf.mxu1  ;;  %2392 = vst [vmem:[%s3312_s26 + $0x10] sm:$0xff] %v2204_v52  }
 0x183   : > { %v811_v20 = vpack.c.bf16 %v780_v17, %v777_v16  ;;  %v801_v22 = vadd.f32 %v2563_v18, %v1954_v53 }
 0x184   : > { %v792_v21 = vpop.f32.mrf.mxu1 }
 0x185   : > { %1047 = vrot.lane.b32.xlu1 %v812_v19, %s2974_s6  ;;  %1045 = vrot.lane.b32.xlu0 %v811_v20, %s2974_s6  ;;  %v793_v26 = vadd.f32 %v1954_v53, %v792_v21 }
 0x186   : > { %2577 = vmatprep.mubr.msk.bf16.mxu0 %vm821_vm0, %v811_v20  ;;  %v2564_v23 = vpop.f32.mrf.mxu1 }
 0x187   : > { %v804_v24 = vadd.f32 %v2564_v23, %v1954_v53  ;;  %2578 = vmatmul.mubr.msk.bf16.gmra.mxu0 %vm821_vm0, %v812_v19 }
 0x188   : > { %v795_v25 = vpop.f32.mrf.mxu1 }
 0x189   : > { %v814_v27 = vpack.c.bf16 %v804_v24, %v801_v22  ;;  %v796_v28 = vadd.f32 %v1954_v53, %v795_v25  ;;  %v544_v53 = vpop.f32.mrf.mxu0 }
 0x18a   : > { %v545_v56 = vadd.f32 %v1937_v31, %v544_v53 }
 0x18b   : > { %v813_v29 = vpack.c.bf16 %v796_v28, %v793_v26  ;;  %1051 = vrot.lane.b32.xlu1 %v814_v27, %s2974_s6  ;;  %v2528_v55 = vpop.f32.mrf.mxu0 }
 0x18c   : > { %v556_v57 = vadd.f32 %v2528_v55, %v1937_v31 }
 0x18d   : > { %1049 = vrot.lane.b32.xlu0 %v813_v29, %s2974_s6  ;;  %2581 = vmatprep.mubr.msk.bf16.mxu0 %vm821_vm0, %v813_v29  ;;  %v547_v58 = vpop.f32.mrf.mxu0 }
 0x18e   : > { %v2219_v59 = vpack.c.bf16 %v556_v57, %v553_v54 }
 0x18f   : > { %2582 = vmatmul.mubr.msk.bf16.gmra.mxu0 %vm821_vm0, %v814_v27  ;;  %1485 = vrot.lane.b32.xlu1 %v807_v60, %s2975_s24  ;;  %v2531_v62 = vpop.f32.mrf.mxu0 }
 0x190   : > { %2395 = vst [vmem:[%s3312_s26 + $0x28] sm:$0xff] %v2219_v59   ;;  %v569_v0 = vadd.f32 %v2531_v62, %v1937_v31 }
 0x191   : > { %1261 = vrot.lane.b32.xlu0 %v807_v60, %s2976_s19  ;;  %v548_v60 = vadd.f32 %v1937_v31, %v547_v58  ;;  %v560_v63 = vpop.f32.mrf.mxu0 }
 0x192   : > { %v561_v2 = vadd.f32 %v1937_v31, %v560_v63 }
 0x193   : > { %1487 = vrot.lane.b32.xlu1 %v808_v61, %s2975_s24  ;;  %v2532_v1 = vpop.f32.mrf.mxu0 }
 0x194   : > { %v572_v3 = vadd.f32 %v2532_v1, %v1937_v31 }
 0x195   : > { %1263 = vrot.lane.b32.xlu0 %v808_v61, %s2976_s19  ;;  %v2214_v61 = vpack.c.bf16 %v548_v60, %v545_v56  ;;  %v563_v4 = vpop.f32.mrf.mxu0 }
 0x196   : > { %v2229_v5 = vpack.c.bf16 %v572_v3, %v569_v0  ;;  %v564_v6 = vadd.f32 %v1937_v31, %v563_v4 }
 0x197   : > { %1489 = vrot.lane.b32.xlu1 %v809_v9, %s2975_s24  ;;  %2394 = vst [vmem:[%s3312_s26 + $0x20] sm:$0xff] %v2214_v61  }
 0x198   : > { %2397 = vst [vmem:[%s3312_s26 + $0x38] sm:$0xff] %v2229_v5   ;;  %v2224_v7 = vpack.c.bf16 %v564_v6, %v561_v2 }
 0x199   : > { %1265 = vrot.lane.b32.xlu0 %v809_v9, %s2976_s19  ;;  %v1479_v9 = vld [vmem:[#allocation10 + $0x60] sm:$0xff] }
 0x19a   : > { %2396 = vst [vmem:[%s3312_s26 + $0x30] sm:$0xff] %v2224_v7  }
 0x19b   : > { %1491 = vrot.lane.b32.xlu1 %v810_v10, %s2975_s24 }
 0x19d   : > { %1267 = vrot.lane.b32.xlu0 %v810_v10, %s2976_s19  ;;  %v1480_v10 = vld [vmem:[#allocation10 + $0x68] sm:$0xff] }
 0x19e   : > { %v1483_v11 = vpack.c.bf16 %v1480_v10, %v1479_v9 }
 0x19f   : > { %1493 = vrot.lane.b32.xlu1 %v811_v20, %s2975_s24 }
 0x1a1   : > { %1269 = vrot.lane.b32.xlu0 %v811_v20, %s2976_s19 }
 0x1a3   : > { %1495 = vrot.lane.b32.xlu1 %v812_v19, %s2975_s24 }
 0x1a5   : > { %1271 = vrot.lane.b32.xlu0 %v812_v19, %s2976_s19 }
 0x1a7   : > { %1497 = vrot.lane.b32.xlu1 %v813_v29, %s2975_s24 }
 0x1a9   : > { %1273 = vrot.lane.b32.xlu0 %v813_v29, %s2976_s19 }
 0x1ab   : > { %1499 = vrot.lane.b32.xlu1 %v814_v27, %s2975_s24 }
 0x1ad   : > { %1275 = vrot.lane.b32.xlu0 %v814_v27, %s2976_s19 }
 0x1e7   : > { %v1038_v8 = vpop.permute.xlu0 %1037 }
 0x1e8   : > { %2589 = vmatprep.mubr.msk.bf16.mxu1 %vm821_vm0, %v1038_v8 }
 0x1eb   : > { %v1040_v12 = vpop.permute.xlu0 %1039 }
 0x1ec   : > { %2590 = vmatmul.mubr.msk.bf16.vlgmr.msra.gmra.mxu1 %vm821_vm0, %v1040_v12 }
 0x1ed   : > { %2626 = vmatpush3.bf16.msra.mxu1 %v3278_v46 }
 0x1ee   : > { %2627 = vmatprep.subr.bf16.mxu1 %v1483_v11 }
 0x1ef   : > { %v1042_v13 = vpop.permute.xlu1 %1041 }
 0x1f0   : > { %2593 = vmatprep.mubr.msk.bf16.mxu1 %vm821_vm0, %v1042_v13 }
 0x1f1   : > { %2628 = vmatpush3.bf16.msra.mxu1 %v1483_v11 }
 0x1f3   : > { %v1044_v14 = vpop.permute.xlu1 %1043 }
 0x1f4   : > { %2594 = vmatmul.mubr.msk.bf16.gmra.mxu1 %vm821_vm0, %v1044_v14 }
 0x1f7   : > { %v1046_v15 = vpop.permute.xlu0 %1045  ;;  %v1048_v16 = vpop.permute.xlu1 %1047 }
 0x1f8   : > { %2597 = vmatprep.mubr.msk.bf16.mxu1 %vm821_vm0, %v1046_v15 }
 0x1fc   : > { %2598 = vmatmul.mubr.msk.bf16.gmra.mxu1 %vm821_vm0, %v1048_v16 }
 0x1fd   : > { %v1052_v17 = vpop.permute.xlu1 %1051 }
 0x1ff   : > { %v1050_v18 = vpop.permute.xlu0 %1049 }
 0x200   : > { %2601 = vmatprep.mubr.msk.bf16.mxu1 %vm821_vm0, %v1050_v18 }
 0x201   : > { %v1486_v19 = vpop.permute.xlu1 %1485 }
 0x203   : > { %v1262_v46 = vpop.permute.xlu0 %1261 }
 0x204   : > { %2602 = vmatmul.mubr.msk.bf16.gmra.mxu1 %vm821_vm0, %v1052_v17  ;;  %2609 = vmatprep.mubr.msk.bf16.mxu0 %vm821_vm0, %v1262_v46 }
 0x205   : > { %v1488_v20 = vpop.permute.xlu1 %1487  ;;  %2629 = vmatprep.mubr.msk.bf16.mxu1 %vm821_vm0, %v1486_v19 }
 0x207   : > { %v1264_v21 = vpop.permute.xlu0 %1263 }
 0x208   : > { %2610 = vmatmul.mubr.msk.bf16.vlgmr.msra.gmra.mxu0 %vm821_vm0, %v1264_v21 }
 0x209   : > { %v1490_v22 = vpop.permute.xlu1 %1489 }
 0x20b   : > { %v1266_v23 = vpop.permute.xlu0 %1265 }
 0x20c   : > { %2613 = vmatprep.mubr.msk.bf16.mxu0 %vm821_vm0, %v1266_v23  ;;  %2630 = vmatmul.mubr.msk.bf16.vlgmr.msra.gmra.mxu1 %vm821_vm0, %v1488_v20 }
 0x20d   : > { %v1492_v24 = vpop.permute.xlu1 %1491  ;;  %2633 = vmatprep.mubr.msk.bf16.mxu1 %vm821_vm0, %v1490_v22 }
 0x20f   : > { %v1268_v25 = vpop.permute.xlu0 %1267 }
 0x210   : > { %2614 = vmatmul.mubr.msk.bf16.gmra.mxu0 %vm821_vm0, %v1268_v25 }
 0x211   : > { %v1494_v26 = vpop.permute.xlu1 %1493 }
 0x213   : > { %v1270_v27 = vpop.permute.xlu0 %1269 }
 0x214   : > { %2617 = vmatprep.mubr.msk.bf16.mxu0 %vm821_vm0, %v1270_v27  ;;  %2634 = vmatmul.mubr.msk.bf16.gmra.mxu1 %vm821_vm0, %v1492_v24 }
 0x215   : > { %2637 = vmatprep.mubr.msk.bf16.mxu1 %vm821_vm0, %v1494_v26  ;;  %v1496_v28 = vpop.permute.xlu1 %1495 }
 0x217   : > { %v1272_v29 = vpop.permute.xlu0 %1271 }
 0x218   : > { %2618 = vmatmul.mubr.msk.bf16.gmra.mxu0 %vm821_vm0, %v1272_v29 }
 0x219   : > { %v1498_v31 = vpop.permute.xlu1 %1497 }
 0x21b   : > { %v1274_v30 = vpop.permute.xlu0 %1273 }
 0x21c   : > { %2621 = vmatprep.mubr.msk.bf16.mxu0 %vm821_vm0, %v1274_v30  ;;  %2638 = vmatmul.mubr.msk.bf16.gmra.mxu1 %vm821_vm0, %v1496_v28 }
 0x21d   : > { %2641 = vmatprep.mubr.msk.bf16.mxu1 %vm821_vm0, %v1498_v31  ;;  %v1500_v33 = vpop.permute.xlu1 %1499 }
 0x21f   : > { %v1276_v32 = vpop.permute.xlu0 %1275 }
 0x220   : > { %2622 = vmatmul.mubr.msk.bf16.gmra.mxu0 %vm821_vm0, %v1276_v32 }
 0x224   : > { %2642 = vmatmul.mubr.msk.bf16.gmra.mxu1 %vm821_vm0, %v1500_v33 }
 0x236   : > { %v2571_v34 = vpop.f32.mrf.mxu0 }
 0x238   : > { %v880_v35 = vpop.f32.mrf.mxu0 }
 0x23a   : > { %v2572_v36 = vpop.f32.mrf.mxu0 }
 0x23b   : > { %v2239_v37 = vpack.c.bf16 %v2572_v36, %v2571_v34 }
 0x23c   : > { %v883_v38 = vpop.f32.mrf.mxu0 }
 0x23d   : > { %2398 = vst [vmem:[%s3356_s17 + $0x8] sm:$0xff] %v2239_v37   ;;  %v2234_v39 = vpack.c.bf16 %v883_v38, %v880_v35 }
 0x23e   : > { %v2575_v40 = vpop.f32.mrf.mxu0 }
 0x23f   : > { %2235 = vst [vmem:[%s3356_s17] sm:$0xff] %v2234_v39  }
 0x240   : > { %v896_v41 = vpop.f32.mrf.mxu0 }
 0x242   : > { %v2576_v42 = vpop.f32.mrf.mxu0 }
 0x243   : > { %v2249_v43 = vpack.c.bf16 %v2576_v42, %v2575_v40 }
 0x244   : > { %v899_v44 = vpop.f32.mrf.mxu0 }
 0x245   : > { %2400 = vst [vmem:[%s3356_s17 + $0x18] sm:$0xff] %v2249_v43   ;;  %v2244_v45 = vpack.c.bf16 %v899_v44, %v896_v41 }
 0x247   : > { %2399 = vst [vmem:[%s3356_s17 + $0x10] sm:$0xff] %v2244_v45   ;;  %v2579_v47 = vpop.f32.mrf.mxu0 }
 0x249   : > { %v912_v48 = vpop.f32.mrf.mxu0 }
 0x24b   : > { %v2580_v49 = vpop.f32.mrf.mxu0 }
 0x24c   : > { %v2259_v50 = vpack.c.bf16 %v2580_v49, %v2579_v47 }
 0x24d   : > { %v915_v51 = vpop.f32.mrf.mxu0 }
 0x24e   : > { %2402 = vst [vmem:[%s3356_s17 + $0x28] sm:$0xff] %v2259_v50   ;;  %v2254_v52 = vpack.c.bf16 %v915_v51, %v912_v48 }
 0x24f   : > { %v2583_v53 = vpop.f32.mrf.mxu0 }
 0x250   : > { %2401 = vst [vmem:[%s3356_s17 + $0x20] sm:$0xff] %v2254_v52  }
 0x251   : > { %v928_v54 = vpop.f32.mrf.mxu0 }
 0x253   : > { %v2584_v55 = vpop.f32.mrf.mxu0 }
 0x254   : > { %v2269_v56 = vpack.c.bf16 %v2584_v55, %v2583_v53 }
 0x255   : > { %v931_v57 = vpop.f32.mrf.mxu0 }
 0x256   : > { %2404 = vst [vmem:[%s3356_s17 + $0x38] sm:$0xff] %v2269_v56   ;;  %v2264_v58 = vpack.c.bf16 %v931_v57, %v928_v54 }
 0x258   : > { %2403 = vst [vmem:[%s3356_s17 + $0x30] sm:$0xff] %v2264_v58  }
 0x259   : > { %2898 = shalt.err (!%p2895_p6)
}
 0x25a   : > { %s2899_s6 = scalar_lea.hbm %s3375_s10, 1024  ;;  %s2903_s4 = scalar_lea.hbm %s3472_s7, 2048 }
 0x25b   : > { %p2900_p7 = scmp.ne.s32.totalorder %s3375_s10, %s2899_s6  ;;  %p2904_p11 = scmp.lt.s32.totalorder %s3375_s10, %s3472_s7 }
 0x25c   : > { %p2905_p3 = scmp.lt.s32.totalorder %s2903_s4, %s2899_s6 }
 0x25d   : > { %p2901_p5 = pnand %p2900_p7, %p3508_p13 }
 0x25e   : > { %p2906_p12 = por %p2905_p3, %p2904_p11 }
 0x25f   : > { %p2902_p8 = pneg %p2901_p5 }
 0x261   : > { %p2907_p9 = pnand %p2906_p12, %p2902_p8 }
 0x263   : > { %2910 = shalt.err (!%p2907_p9)
}
 0x264   : > { %s2978_s20 = smov 4  }
 0x265   : > { %2661 = dma.vmem_to_hbm [thread:$0]  (%p3508_p13), %s3367_s16, 1024, %s3375_s10, %s1704_s21, %s2976_s19, %s2976_s19, %s2978_s20  }
 0x266   : > { %s1709_s19 = scalar_lea.sflag [#allocation13], %s3221_s0 }
 0x2ac   : > { %v2591_v59 = vpop.f32.mrf.mxu1 }
 0x2ae   : > { %v1111_v60 = vpop.f32.mrf.mxu1 }
 0x2b0   : > { %v2592_v61 = vpop.f32.mrf.mxu1 }
 0x2b1   : > { %v2279_v62 = vpack.c.bf16 %v2592_v61, %v2591_v59 }
 0x2b2   : > { %v1114_v63 = vpop.f32.mrf.mxu1 }
 0x2b3   : > { %2406 = vst [vmem:[%s3356_s17 + $0x48] sm:$0xff] %v2279_v62   ;;  %v2274_v0 = vpack.c.bf16 %v1114_v63, %v1111_v60 }
 0x2b4   : > { %v2595_v1 = vpop.f32.mrf.mxu1 }
 0x2b5   : > { %2405 = vst [vmem:[%s3356_s17 + $0x40] sm:$0xff] %v2274_v0  }
 0x2b6   : > { %v1127_v2 = vpop.f32.mrf.mxu1 }
 0x2b8   : > { %v2596_v3 = vpop.f32.mrf.mxu1 }
 0x2b9   : > { %v2289_v4 = vpack.c.bf16 %v2596_v3, %v2595_v1 }
 0x2ba   : > { %v1130_v5 = vpop.f32.mrf.mxu1 }
 0x2bb   : > { %2408 = vst [vmem:[%s3356_s17 + $0x58] sm:$0xff] %v2289_v4   ;;  %v2284_v6 = vpack.c.bf16 %v1130_v5, %v1127_v2 }
 0x2bc   : > { %v2599_v7 = vpop.f32.mrf.mxu1 }
 0x2bd   : > { %2407 = vst [vmem:[%s3356_s17 + $0x50] sm:$0xff] %v2284_v6  }
 0x2be   : > { %v1143_v8 = vpop.f32.mrf.mxu1 }
 0x2c0   : > { %v2600_v9 = vpop.f32.mrf.mxu1 }
 0x2c1   : > { %v2299_v10 = vpack.c.bf16 %v2600_v9, %v2599_v7 }
 0x2c2   : > { %v1146_v11 = vpop.f32.mrf.mxu1 }
 0x2c3   : > { %2410 = vst [vmem:[%s3356_s17 + $0x68] sm:$0xff] %v2299_v10   ;;  %v2294_v12 = vpack.c.bf16 %v1146_v11, %v1143_v8 }
 0x2c4   : > { %v2603_v13 = vpop.f32.mrf.mxu1 }
 0x2c5   : > { %2409 = vst [vmem:[%s3356_s17 + $0x60] sm:$0xff] %v2294_v12  }
 0x2c6   : > { %v1159_v14 = vpop.f32.mrf.mxu1 }
 0x2c8   : > { %v2604_v15 = vpop.f32.mrf.mxu1  ;;  %v2611_v16 = vpop.f32.mrf.mxu0 }
 0x2c9   : > { %v2309_v17 = vpack.c.bf16 %v2604_v15, %v2603_v13 }
 0x2ca   : > { %v1162_v18 = vpop.f32.mrf.mxu1  ;;  %v1335_v19 = vpop.f32.mrf.mxu0 }
 0x2cb   : > { %2412 = vst [vmem:[%s3356_s17 + $0x78] sm:$0xff] %v2309_v17   ;;  %v2304_v46 = vpack.c.bf16 %v1162_v18, %v1159_v14 }
 0x2cc   : > { %v2612_v20 = vpop.f32.mrf.mxu0  ;;  %v2631_v21 = vpop.f32.mrf.mxu1 }
 0x2cd   : > { %2411 = vst [vmem:[%s3356_s17 + $0x70] sm:$0xff] %v2304_v46   ;;  %v2319_v22 = vpack.c.bf16 %v2612_v20, %v2611_v16 }
 0x2ce   : > { %v1338_v23 = vpop.f32.mrf.mxu0  ;;  %v1559_v24 = vpop.f32.mrf.mxu1 }
 0x2cf   : > { %2414 = vst [vmem:[%s3356_s17 + $0x88] sm:$0xff] %v2319_v22   ;;  %v2314_v25 = vpack.c.bf16 %v1338_v23, %v1335_v19 }
 0x2d0   : > { %v2615_v26 = vpop.f32.mrf.mxu0  ;;  %v2632_v27 = vpop.f32.mrf.mxu1 }
 0x2d1   : > { %2413 = vst [vmem:[%s3356_s17 + $0x80] sm:$0xff] %v2314_v25   ;;  %v2359_v28 = vpack.c.bf16 %v2632_v27, %v2631_v21 }
 0x2d2   : > { %v1351_v29 = vpop.f32.mrf.mxu0  ;;  %v1562_v30 = vpop.f32.mrf.mxu1 }
 0x2d3   : > { %2422 = vst [vmem:[%s3356_s17 + $0xc8] sm:$0xff] %v2359_v28   ;;  %v2354_v31 = vpack.c.bf16 %v1562_v30, %v1559_v24 }
 0x2d4   : > { %v2616_v32 = vpop.f32.mrf.mxu0  ;;  %v2635_v33 = vpop.f32.mrf.mxu1 }
 0x2d5   : > { %2421 = vst [vmem:[%s3356_s17 + $0xc0] sm:$0xff] %v2354_v31   ;;  %v2329_v34 = vpack.c.bf16 %v2616_v32, %v2615_v26 }
 0x2d6   : > { %v1354_v35 = vpop.f32.mrf.mxu0  ;;  %v1575_v36 = vpop.f32.mrf.mxu1 }
 0x2d7   : > { %2416 = vst [vmem:[%s3356_s17 + $0x98] sm:$0xff] %v2329_v34   ;;  %v2324_v37 = vpack.c.bf16 %v1354_v35, %v1351_v29 }
 0x2d8   : > { %v2619_v38 = vpop.f32.mrf.mxu0  ;;  %v2636_v39 = vpop.f32.mrf.mxu1 }
 0x2d9   : > { %2415 = vst [vmem:[%s3356_s17 + $0x90] sm:$0xff] %v2324_v37   ;;  %v2369_v40 = vpack.c.bf16 %v2636_v39, %v2635_v33 }
 0x2da   : > { %v1367_v41 = vpop.f32.mrf.mxu0  ;;  %v1578_v42 = vpop.f32.mrf.mxu1 }
 0x2db   : > { %2424 = vst [vmem:[%s3356_s17 + $0xd8] sm:$0xff] %v2369_v40   ;;  %v2364_v43 = vpack.c.bf16 %v1578_v42, %v1575_v36 }
 0x2dc   : > { %v2620_v44 = vpop.f32.mrf.mxu0  ;;  %v2639_v45 = vpop.f32.mrf.mxu1 }
 0x2dd   : > { %2423 = vst [vmem:[%s3356_s17 + $0xd0] sm:$0xff] %v2364_v43   ;;  %v2339_v47 = vpack.c.bf16 %v2620_v44, %v2619_v38 }
 0x2de   : > { %v1370_v48 = vpop.f32.mrf.mxu0  ;;  %v1591_v49 = vpop.f32.mrf.mxu1 }
 0x2df   : > { %2418 = vst [vmem:[%s3356_s17 + $0xa8] sm:$0xff] %v2339_v47   ;;  %v2334_v50 = vpack.c.bf16 %v1370_v48, %v1367_v41 }
 0x2e0   : > { %v2623_v51 = vpop.f32.mrf.mxu0  ;;  %v2640_v52 = vpop.f32.mrf.mxu1 }
 0x2e1   : > { %2417 = vst [vmem:[%s3356_s17 + $0xa0] sm:$0xff] %v2334_v50   ;;  %v2379_v53 = vpack.c.bf16 %v2640_v52, %v2639_v45 }
 0x2e2   : > { %v1383_v54 = vpop.f32.mrf.mxu0  ;;  %v1594_v55 = vpop.f32.mrf.mxu1 }
 0x2e3   : > { %2426 = vst [vmem:[%s3356_s17 + $0xe8] sm:$0xff] %v2379_v53   ;;  %v2374_v56 = vpack.c.bf16 %v1594_v55, %v1591_v49 }
 0x2e4   : > { %v2624_v57 = vpop.f32.mrf.mxu0  ;;  %v2643_v58 = vpop.f32.mrf.mxu1 }
 0x2e5   : > { %2425 = vst [vmem:[%s3356_s17 + $0xe0] sm:$0xff] %v2374_v56   ;;  %v2349_v59 = vpack.c.bf16 %v2624_v57, %v2623_v51 }
 0x2e6   : > { %v1386_v60 = vpop.f32.mrf.mxu0  ;;  %v1607_v61 = vpop.f32.mrf.mxu1 }
 0x2e7   : > { %2420 = vst [vmem:[%s3356_s17 + $0xb8] sm:$0xff] %v2349_v59   ;;  %v2344_v62 = vpack.c.bf16 %v1386_v60, %v1383_v54 }
 0x2e8   : > { %v2644_v63 = vpop.f32.mrf.mxu1 }
 0x2e9   : > { %2419 = vst [vmem:[%s3356_s17 + $0xb0] sm:$0xff] %v2344_v62   ;;  %v2389_v0 = vpack.c.bf16 %v2644_v63, %v2643_v58 }
 0x2ea   : > { %v1610_v1 = vpop.f32.mrf.mxu1 }
 0x2eb   : > { %2428 = vst [vmem:[%s3356_s17 + $0xf8] sm:$0xff] %v2389_v0   ;;  %v2384_v2 = vpack.c.bf16 %v1610_v1, %v1607_v61 }
 0x2ed   : > { %2427 = vst [vmem:[%s3356_s17 + $0xf0] sm:$0xff] %v2384_v2  }
 0x2ee   : > { %s1737_s29 = scalar_lea.hbm %s3473_s8, %s2189_s15  ;;  %s1748_s10 = sshll.u32 %s3356_s17, 4  ;;  %s1749_s10 = int_to_ptr.vmem [resolvable:$true] %s1748_s10 }
 0x2ef   : > { %s2979_s21 = smov 1024   ;;  %s2980_s0 = smov 2048  }
 0x2f0   : > { %2662 = sst [smem:[#allocation15]] (%p3508_p13), %s2979_s21  ;;  %s2981_s9 = smov 16  }
 0x2f1   : > { %2663 = sst [smem:[#allocation15 + $0x1]] (%p3508_p13), %s2980_s0  ;;  %s2982_s13 = smov 64  }
 0x2f2   : > { %2664 = sst [smem:[#allocation15 + $0x2]] (%p3508_p13), %s2981_s9  ;;  %s2983_s14 = smov 4  }
 0x2f3   : > { %2665 = sst [smem:[#allocation15 + $0x3]] (%p3508_p13), %s2982_s13  ;;  %s2984_s15 = smov 131072  }
 0x2f4   : > { %2666 = sst [smem:[#allocation15 + $0x4]] (%p3508_p13), %s2982_s13  ;;  %s2985_s17 = smov 0  }
 0x2f5   : > { %2667 = sst [smem:[#allocation15 + $0x5]] (%p3508_p13), %s2983_s14 }
 0x2f6   : > { %2668 = dma.general (%p3508_p13), %s1749_s10, 4096, %s1737_s29, %s1709_s19, %s2984_s15, [#allocation15], %s2985_s17, 0  }
 0x2f7 PF: > { %s1776_s11 = sand.u32 1, %s2953_s27   ;;  %p3509_p0 = scmp.ne.s32.totalorder %s3490_s12, 0 }
 0x2f8   : > { %p3510_p2 = scmp.ge.s32.totalorder %s2965_s30, 2  ;;  %s1777_s2 = scalar_lea.sflag [#allocation4], %s1776_s11 }
 0x2fa   : > { %p2689_p10 = pnand %p3510_p2, %p3509_p0 }
 0x2fc   : > { %p2690_p1 = pneg %p2689_p10 }
 0x2fe   : > { %2944 = dma.done.wait (%p2690_p1), %s1777_s2, 1024  }
 0x2ff   : > { %2946 = vsyncadd (%p2690_p1), %s1777_s2, 4294966272  ;;  %s1786_s6 = scalar_lea.sflag [#allocation13], %s1776_s11 }
 0x300   : > { %2948 = dma.done.wait (%p2690_p1), %s1786_s6, 4096  }
 0x301   : > { %2950 = vsyncadd (%p2690_p1), %s1786_s6, 4294963200  ;;  %s3511_s30 = sld [smem:[#allocation23_spill]]  ;;  %s3514_s27 = smov %s2957_s28 }
 0x302   : > { %s3512_s24 = sld [smem:[#allocation22_spill]] }
 0x303   : > { %s3513_s29 = sld [smem:[#allocation24_spill]] }
 0x307   : > { %p29_p13 = scmp.ge.s32.totalorder %s3511_s30, 4  }
 0x308   : > { %s3515_s28 = smov %s3512_s24 }
 0x309   :  { %31 = sbr.rel (!%p29_p13) target bundleno = 15 (0xf), region = 143 }
 0x30e   :  { %1791 = vsyncpa [#allocation3], 1 }
 0x30f   :  { %1793 = vsyncpa [#allocation3 + $0x1], 1 }
 0x310   :  { %1794 = vsyncpa [#allocation6], 1 }
 0x311   :  { %1796 = vsyncpa [#allocation6 + $0x1], 1 }
 0x312   :  { %1797 = vsyncpa [#allocation9], 1 }
 0x313   :  { %1798 = vsyncpa [#allocation4], 1 }
 0x314   :  { %1800 = vsyncpa [#allocation4 + $0x1], 1 }
 0x315   :  { %1801 = vsyncpa [#allocation13], 1 }
 0x316   :  { %1803 = vsyncpa [#allocation13 + $0x1], 1 }

</bundles_post_ra>
